<compile_context>
chip_gen: v7x
topology: tpu7x:2x2x1
jax: 0.10.0
libtpu: 0.0.40
codegen_flags: <defaults>
</compile_context>

<pallas_src>
import functools

import numpy as np

import jax
import jax.numpy as jnp
from jax.experimental import pallas as pl
from jax.experimental.pallas import tpu as pltpu

# ---- model hyper-parameters (from the PyTorch module) ----
block_size = 8
n_embed = 32
n_heads = 4
head_size = n_embed // n_heads        # 8
vocab_size = 65                       # synthetic char vocab (len(chars))
VOCAB_PAD = 128                       # lane-dense padded vocab for the kernel
POS_BASE = VOCAB_PAD - block_size     # position rows live at 120..127 of emb_pad


def gpt_forward_kernel(idx_ref, mask_ref, emb_ref, wkv_ref, wlm_ref, blm_ref,
                       out_ref, att_ref, *, seq_len):
    """Whole batch in one grid step.

    idx_ref  : (B*T, 1)  int32   flattened token ids
    mask_ref : (B*T, B*T) f32    additive block-diagonal causal bias (0 / -inf)
    emb_ref  : (128, C)          rows [0:vocab) = token table, rows [120:128) = pos table
    wkv_ref  : (C, 2C)           packed key|value projection (head h keys = cols h*hs..)
    wlm_ref  : (C, 128)          lm_head weight, zero-padded past vocab_size
    blm_ref  : (1, 128)          lm_head bias, zero-padded past vocab_size
    out_ref  : (B*T, 128)        padded logits
    att_ref  : (B*T, C) VMEM     scratch holding concatenated head outputs
    """
    BT = idx_ref.shape[0]
    scale = jnp.float32(n_embed) ** -0.5   # reference uses C**-0.5 with C = n_embed

    # Fused embedding lookup: (token one-hot + position one-hot) @ packed table.
    # Token ids < 65 <= POS_BASE, so the two one-hots never collide.
    lane = jax.lax.broadcasted_iota(jnp.int32, (BT, VOCAB_PAD), 1)
    row = jax.lax.broadcasted_iota(jnp.int32, (BT, VOCAB_PAD), 0)
    tok_sel = lane == idx_ref[...]
    pos_sel = lane == (row % seq_len + POS_BASE)
    sel = jnp.logical_or(tok_sel, pos_sel).astype(jnp.float32)          # (BT, 128)
    x = jnp.dot(sel, emb_ref[...], preferred_element_type=jnp.float32)  # (BT, C)

    # Single fused K|V projection: one (BT, C) @ (C, 2C) matmul.
    kv = jnp.dot(x, wkv_ref[...], preferred_element_type=jnp.float32)   # (BT, 2C)

    mask = mask_ref[...]                      # additive 0 / -inf block-causal bias

    for h in range(n_heads):                  # static unroll, n_heads = 4
        lo = h * head_size
        k = kv[:, lo:lo + head_size]                        # (BT, hs) static slice
        q = k                                               # reference bug: q = self.key(x)
        v = kv[:, n_embed + lo:n_embed + lo + head_size]    # (BT, hs)

        w = jnp.dot(q, k.T, preferred_element_type=jnp.float32) * scale + mask
        w = w - jnp.max(w, axis=-1, keepdims=True)          # safe: diagonal unmasked
        e = jnp.exp(w)
        p = e / jnp.sum(e, axis=-1, keepdims=True)          # exact softmax(dim=-1)

        att_ref[:, lo:lo + head_size] = jnp.dot(p, v, preferred_element_type=jnp.float32)

    # Single lane-dense lm_head matmul over the assembled head outputs.
    out_ref[...] = (jnp.dot(att_ref[...], wlm_ref[...],
                            preferred_element_type=jnp.float32) + blm_ref[...])


def _block_causal_bias(B, T):
    """Trace-time numpy constant: 0 where attention allowed, -inf elsewhere."""
    r = np.arange(B * T)
    same_batch = (r[:, None] // T) == (r[None, :] // T)
    causal = (r[None, :] % T) <= (r[:, None] % T)
    return np.where(same_batch & causal, 0.0, -np.inf).astype(np.float32)


def prepare_params(params):
    """Pack weights once; reuse the packed tuple for every forward call."""
    tok_tab, pos_tab, wk, wv, wlm, blm = params
    assert vocab_size <= POS_BASE, "token rows and position rows must not overlap"

    # Combined embedding table: token rows [0:vocab), position rows at the top.
    emb_pad = jnp.zeros((VOCAB_PAD, n_embed), jnp.float32)
    emb_pad = emb_pad.at[:vocab_size].set(tok_tab)
    emb_pad = emb_pad.at[POS_BASE:POS_BASE + block_size].set(pos_tab)

    # Fused per-head key / value weights, then packed side by side: (C, 2C).
    wk_all = jnp.transpose(wk, (1, 0, 2)).reshape(n_embed, n_heads * head_size)
    wv_all = jnp.transpose(wv, (1, 0, 2)).reshape(n_embed, n_heads * head_size)
    wkv = jnp.concatenate([wk_all, wv_all], axis=1)

    # Lane-dense lm_head (vocab 65 zero-padded to 128).
    wlm_pad = jnp.zeros((n_embed, VOCAB_PAD), jnp.float32).at[:, :vocab_size].set(wlm)
    blm_pad = jnp.zeros((1, VOCAB_PAD), jnp.float32).at[:, :vocab_size].set(blm)
    return (emb_pad, wkv, wlm_pad, blm_pad)


def gpt_forward(idx, packed):
    """GPTLanguageModel.forward with targets=None -> returns (logits, None)."""
    # TODO(synk): targets / cross-entropy loss path and generate() multinomial
    # sampling are not implemented (forward is only exercised with targets=None).
    emb_pad, wkv, wlm_pad, blm_pad = packed
    B, T = idx.shape
    BT = B * T

    idx_flat = idx.reshape(BT, 1).astype(jnp.int32)
    mask_bias = jnp.asarray(_block_causal_bias(B, T))   # constant under jit

    logits_pad = pl.pallas_call(
        functools.partial(gpt_forward_kernel, seq_len=T),
        out_shape=jax.ShapeDtypeStruct((BT, VOCAB_PAD), jnp.float32),
        grid=(1,),                                      # whole batch in one fat step
        in_specs=[
            pl.BlockSpec((BT, 1), lambda i: (0, 0)),                 # idx
            pl.BlockSpec((BT, BT), lambda i: (0, 0)),                # mask bias
            pl.BlockSpec((VOCAB_PAD, n_embed), lambda i: (0, 0)),    # emb_pad
            pl.BlockSpec((n_embed, 2 * n_embed), lambda i: (0, 0)),  # wkv
            pl.BlockSpec((n_embed, VOCAB_PAD), lambda i: (0, 0)),    # wlm_pad
            pl.BlockSpec((1, VOCAB_PAD), lambda i: (0, 0)),          # blm_pad
        ],
        out_specs=pl.BlockSpec((BT, VOCAB_PAD), lambda i: (0, 0)),
        scratch_shapes=[pltpu.VMEM((BT, n_embed), jnp.float32)],     # head outputs
        compiler_params=pltpu.CompilerParams(dimension_semantics=("arbitrary",)),
    )(idx_flat, mask_bias, emb_pad, wkv, wlm_pad, blm_pad)

    # Strip the lane padding and restore (B, T, V) outside the kernel.
    logits = logits_pad.reshape(B, T, VOCAB_PAD)[:, :, :vocab_size]
    return logits, None


def init_params(key):
    ks = jax.random.split(key, 6)
    tok_tab = jax.random.normal(ks[0], (vocab_size, n_embed), jnp.float32) * 0.02
    pos_tab = jax.random.normal(ks[1], (block_size, n_embed), jnp.float32) * 0.02
    wk = jax.random.normal(ks[2], (n_heads, n_embed, head_size), jnp.float32) * 0.1
    wv = jax.random.normal(ks[3], (n_heads, n_embed, head_size), jnp.float32) * 0.1
    wlm = jax.random.normal(ks[4], (n_embed, vocab_size), jnp.float32) * 0.1
    blm = jax.random.normal(ks[5], (1, vocab_size), jnp.float32) * 0.1
    # query weights exist in the module but are never used in forward (bug in reference)
    return (tok_tab, pos_tab, wk, wv, wlm, blm)


def reference_forward(idx, params):
    """Pure-JAX reference mirroring the PyTorch semantics (incl. q=key bug)."""
    tok_tab, pos_tab, wk, wv, wlm, blm = params
    B, T = idx.shape
    x = jnp.take(tok_tab, idx, axis=0) + pos_tab[:T][None, :, :]          # (B, T, C)
    C = x.shape[-1]
    causal = jnp.tril(jnp.ones((T, T), jnp.bool_))
    outs = []
    for h in range(n_heads):
        k = x @ wk[h]
        q = x @ wk[h]
        w = (q @ jnp.swapaxes(k, -2, -1)) * (C ** -0.5)
        w = jnp.where(causal[None], w, -jnp.inf)
        w = jax.nn.softmax(w, axis=-1)
        v = x @ wv[h]
        outs.append(w @ v)
    att = jnp.concatenate(outs, axis=-1)
    return att @ wlm + blm[0]


if __name__ == "__main__":
    key = jax.random.PRNGKey(0)
    pkey, ikey = jax.random.split(key)
    params = init_params(pkey)
    packed = prepare_params(params)           # packed ONCE, reused every forward

    B, T = 2, block_size
    idx = jax.random.randint(ikey, (B, T), 0, vocab_size, dtype=jnp.int32)

    logits, loss = jax.jit(gpt_forward)(idx, packed)
    logits = jax.block_until_ready(logits)

    ref = reference_forward(idx, params)
    assert logits.shape == (B, T, vocab_size)
    assert loss is None
    assert jnp.allclose(logits, ref, atol=1e-4, rtol=1e-3), "mismatch vs reference"

    print("KERNEL_OK")
</pallas_src>

<mosaic_0001>
module attributes {stable_mosaic.version = 11 : i64} {
  func.func @gpt_forward_kernel(%arg0: i32, %arg1: memref<16x1xi32, #tpu.memory_space<vmem>>, %arg2: memref<16x16xf32, #tpu.memory_space<vmem>>, %arg3: memref<128x32xf32, #tpu.memory_space<vmem>>, %arg4: memref<32x64xf32, #tpu.memory_space<vmem>>, %arg5: memref<32x128xf32, #tpu.memory_space<vmem>>, %arg6: memref<1x128xf32, #tpu.memory_space<vmem>>, %arg7: memref<16x128xf32, #tpu.memory_space<vmem>>, %arg8: memref<16x32xf32, #tpu.memory_space<vmem>>) attributes {dimension_semantics = [#tpu.dimension_semantics<arbitrary>], iteration_bounds = array<i64: 1>, scalar_prefetch = 0 : i64, scratch_operands = 1 : i64, tpu.core_type = #tpu.core_type<tc>, window_params = [{pipeline_mode = #tpu.pipeline_mode<synchronous>, transform_indices = @transform_0, window_bounds = array<i64: 16, 1>}, {pipeline_mode = #tpu.pipeline_mode<synchronous>, transform_indices = @transform_1, window_bounds = array<i64: 16, 16>}, {pipeline_mode = #tpu.pipeline_mode<synchronous>, transform_indices = @transform_2, window_bounds = array<i64: 128, 32>}, {pipeline_mode = #tpu.pipeline_mode<synchronous>, transform_indices = @transform_3, window_bounds = array<i64: 32, 64>}, {pipeline_mode = #tpu.pipeline_mode<synchronous>, transform_indices = @transform_4, window_bounds = array<i64: 32, 128>}, {pipeline_mode = #tpu.pipeline_mode<synchronous>, transform_indices = @transform_5, window_bounds = array<i64: 1, 128>}, {pipeline_mode = #tpu.pipeline_mode<synchronous>, transform_indices = @transform_6, window_bounds = array<i64: 16, 128>}]} {
    %cst = arith.constant 3.200000e+01 : f32
    %cst_0 = arith.constant -5.000000e-01 : f32
    %0 = math.powf %cst, %cst_0 : f32
    %1 = tpu.iota {dimensions = array<i32: 1>} : vector<16x128xi32>
    %2 = tpu.iota {dimensions = array<i32: 0>} : vector<16x128xi32>
    %c0 = arith.constant 0 : index
    %c0_1 = arith.constant 0 : index
    %3 = vector.load %arg1[%c0, %c0_1] : memref<16x1xi32, #tpu.memory_space<vmem>>, vector<16x1xi32>
    %4 = vector.broadcast %3 : vector<16x1xi32> to vector<16x128xi32>
    %5 = arith.cmpi eq, %1, %4 : vector<16x128xi32>
    %c8_i32 = arith.constant 8 : i32
    %c0_i32 = arith.constant 0 : i32
    %6 = arith.cmpi eq, %c8_i32, %c0_i32 : i32
    %c1_i32 = arith.constant 1 : i32
    %7 = arith.select %6, %c1_i32, %c8_i32 : i32
    %8 = vector.broadcast %7 : i32 to vector<16x128xi32>
    %9 = arith.remsi %2, %8 : vector<16x128xi32>
    %c0_i32_2 = arith.constant 0 : i32
    %10 = vector.broadcast %c0_i32_2 : i32 to vector<16x128xi32>
    %11 = arith.cmpi ne, %9, %10 : vector<16x128xi32>
    %c0_i32_3 = arith.constant 0 : i32
    %12 = vector.broadcast %c0_i32_3 : i32 to vector<16x128xi32>
    %13 = arith.cmpi slt, %9, %12 : vector<16x128xi32>
    %c0_i32_4 = arith.constant 0 : i32
    %14 = arith.cmpi slt, %7, %c0_i32_4 : i32
    %15 = vector.broadcast %14 : i1 to vector<16x128xi1>
    %16 = vector.broadcast %15 : vector<16x128xi1> to vector<16x128xi1>
    %17 = arith.xori %13, %16 : vector<16x128xi1>
    %18 = arith.andi %17, %11 : vector<16x128xi1>
    %19 = vector.broadcast %7 : i32 to vector<16x128xi32>
    %20 = arith.addi %9, %19 : vector<16x128xi32>
    %21 = arith.select %18, %20, %9 : vector<16x128xi1>, vector<16x128xi32>
    %c120_i32 = arith.constant 120 : i32
    %22 = vector.broadcast %c120_i32 : i32 to vector<16x128xi32>
    %23 = arith.addi %21, %22 : vector<16x128xi32>
    %24 = arith.cmpi eq, %1, %23 : vector<16x128xi32>
    %25 = arith.ori %5, %24 : vector<16x128xi1>
    %26 = arith.extui %25 : vector<16x128xi1> to vector<16x128xi32>
    %27 = arith.sitofp %26 : vector<16x128xi32> to vector<16x128xf32>
    %c0_5 = arith.constant 0 : index
    %c0_6 = arith.constant 0 : index
    %28 = vector.load %arg3[%c0_5, %c0_6] : memref<128x32xf32, #tpu.memory_space<vmem>>, vector<128x32xf32>
    %cst_7 = arith.constant dense<0.000000e+00> : vector<16x32xf32>
    %29 = tpu.matmul %27, %28, %cst_7 {dimension_numbers = #tpu.dot_dimension_numbers<[1], [0], [0], [1], [0, 0, 1, 1], [], []>} : vector<16x128xf32>, vector<128x32xf32>, vector<16x32xf32> -> vector<16x32xf32>
    %c0_8 = arith.constant 0 : index
    %c0_9 = arith.constant 0 : index
    %30 = vector.load %arg4[%c0_8, %c0_9] : memref<32x64xf32, #tpu.memory_space<vmem>>, vector<32x64xf32>
    %cst_10 = arith.constant dense<0.000000e+00> : vector<16x64xf32>
    %31 = tpu.matmul %29, %30, %cst_10 {dimension_numbers = #tpu.dot_dimension_numbers<[1], [0], [0], [1], [0, 0, 1, 1], [], []>} : vector<16x32xf32>, vector<32x64xf32>, vector<16x64xf32> -> vector<16x64xf32>
    %c0_11 = arith.constant 0 : index
    %c0_12 = arith.constant 0 : index
    %32 = vector.load %arg2[%c0_11, %c0_12] : memref<16x16xf32, #tpu.memory_space<vmem>>, vector<16x16xf32>
    %33 = vector.extract_strided_slice %31 {offsets = [0, 0], sizes = [16, 8], strides = [1, 1]} : vector<16x64xf32> to vector<16x8xf32>
    %34 = vector.extract_strided_slice %31 {offsets = [0, 32], sizes = [16, 8], strides = [1, 1]} : vector<16x64xf32> to vector<16x8xf32>
    %35 = tpu.transpose %33, [1, 0] : vector<16x8xf32> -> vector<8x16xf32>
    %cst_13 = arith.constant dense<0.000000e+00> : vector<16x16xf32>
    %36 = tpu.matmul %33, %35, %cst_13 {dimension_numbers = #tpu.dot_dimension_numbers<[1], [0], [0], [1], [0, 0, 1, 1], [], []>} : vector<16x8xf32>, vector<8x16xf32>, vector<16x16xf32> -> vector<16x16xf32>
    %37 = vector.broadcast %0 : f32 to vector<16x16xf32>
    %38 = arith.mulf %36, %37 : vector<16x16xf32>
    %39 = arith.addf %38, %32 : vector<16x16xf32>
    %cst_14 = arith.constant dense<0xFF800000> : vector<16xf32>
    %40 = vector.multi_reduction <maximumf>, %39, %cst_14 [1] : vector<16x16xf32> to vector<16xf32>
    %41 = vector.shape_cast %40 : vector<16xf32> to vector<16x1xf32>
    %42 = vector.broadcast %41 : vector<16x1xf32> to vector<16x16xf32>
    %43 = arith.subf %39, %42 : vector<16x16xf32>
    %44 = math.exp %43 : vector<16x16xf32>
    %cst_15 = arith.constant dense<0.000000e+00> : vector<16xf32>
    %45 = vector.multi_reduction <add>, %44, %cst_15 [1] : vector<16x16xf32> to vector<16xf32>
    %46 = vector.shape_cast %45 : vector<16xf32> to vector<16x1xf32>
    %47 = vector.broadcast %46 : vector<16x1xf32> to vector<16x16xf32>
    %48 = arith.divf %44, %47 : vector<16x16xf32>
    %cst_16 = arith.constant dense<0.000000e+00> : vector<16x8xf32>
    %49 = tpu.matmul %48, %34, %cst_16 {dimension_numbers = #tpu.dot_dimension_numbers<[1], [0], [0], [1], [0, 0, 1, 1], [], []>} : vector<16x16xf32>, vector<16x8xf32>, vector<16x8xf32> -> vector<16x8xf32>
    %c0_17 = arith.constant 0 : index
    %c0_18 = arith.constant 0 : index
    %50 = vector.load %arg8[%c0_17, %c0_18] : memref<16x32xf32, #tpu.memory_space<vmem>>, vector<16x8xf32>
    tpu.vector_store %arg8[%c0_17, %c0_18], %49 {strides = array<i32>} : memref<16x32xf32, #tpu.memory_space<vmem>>, vector<16x8xf32>,
    %51 = vector.extract_strided_slice %31 {offsets = [0, 8], sizes = [16, 8], strides = [1, 1]} : vector<16x64xf32> to vector<16x8xf32>
    %52 = vector.extract_strided_slice %31 {offsets = [0, 40], sizes = [16, 8], strides = [1, 1]} : vector<16x64xf32> to vector<16x8xf32>
    %53 = tpu.transpose %51, [1, 0] : vector<16x8xf32> -> vector<8x16xf32>
    %cst_19 = arith.constant dense<0.000000e+00> : vector<16x16xf32>
    %54 = tpu.matmul %51, %53, %cst_19 {dimension_numbers = #tpu.dot_dimension_numbers<[1], [0], [0], [1], [0, 0, 1, 1], [], []>} : vector<16x8xf32>, vector<8x16xf32>, vector<16x16xf32> -> vector<16x16xf32>
    %55 = vector.broadcast %0 : f32 to vector<16x16xf32>
    %56 = arith.mulf %54, %55 : vector<16x16xf32>
    %57 = arith.addf %56, %32 : vector<16x16xf32>
    %cst_20 = arith.constant dense<0xFF800000> : vector<16xf32>
    %58 = vector.multi_reduction <maximumf>, %57, %cst_20 [1] : vector<16x16xf32> to vector<16xf32>
    %59 = vector.shape_cast %58 : vector<16xf32> to vector<16x1xf32>
    %60 = vector.broadcast %59 : vector<16x1xf32> to vector<16x16xf32>
    %61 = arith.subf %57, %60 : vector<16x16xf32>
    %62 = math.exp %61 : vector<16x16xf32>
    %cst_21 = arith.constant dense<0.000000e+00> : vector<16xf32>
    %63 = vector.multi_reduction <add>, %62, %cst_21 [1] : vector<16x16xf32> to vector<16xf32>
    %64 = vector.shape_cast %63 : vector<16xf32> to vector<16x1xf32>
    %65 = vector.broadcast %64 : vector<16x1xf32> to vector<16x16xf32>
    %66 = arith.divf %62, %65 : vector<16x16xf32>
    %cst_22 = arith.constant dense<0.000000e+00> : vector<16x8xf32>
    %67 = tpu.matmul %66, %52, %cst_22 {dimension_numbers = #tpu.dot_dimension_numbers<[1], [0], [0], [1], [0, 0, 1, 1], [], []>} : vector<16x16xf32>, vector<16x8xf32>, vector<16x8xf32> -> vector<16x8xf32>
    %c0_23 = arith.constant 0 : index
    %c8 = arith.constant 8 : index
    %68 = vector.load %arg8[%c0_23, %c8] : memref<16x32xf32, #tpu.memory_space<vmem>>, vector<16x8xf32>
    tpu.vector_store %arg8[%c0_23, %c8], %67 {strides = array<i32>} : memref<16x32xf32, #tpu.memory_space<vmem>>, vector<16x8xf32>,
    %69 = vector.extract_strided_slice %31 {offsets = [0, 16], sizes = [16, 8], strides = [1, 1]} : vector<16x64xf32> to vector<16x8xf32>
    %70 = vector.extract_strided_slice %31 {offsets = [0, 48], sizes = [16, 8], strides = [1, 1]} : vector<16x64xf32> to vector<16x8xf32>
    %71 = tpu.transpose %69, [1, 0] : vector<16x8xf32> -> vector<8x16xf32>
    %cst_24 = arith.constant dense<0.000000e+00> : vector<16x16xf32>
    %72 = tpu.matmul %69, %71, %cst_24 {dimension_numbers = #tpu.dot_dimension_numbers<[1], [0], [0], [1], [0, 0, 1, 1], [], []>} : vector<16x8xf32>, vector<8x16xf32>, vector<16x16xf32> -> vector<16x16xf32>
    %73 = vector.broadcast %0 : f32 to vector<16x16xf32>
    %74 = arith.mulf %72, %73 : vector<16x16xf32>
    %75 = arith.addf %74, %32 : vector<16x16xf32>
    %cst_25 = arith.constant dense<0xFF800000> : vector<16xf32>
    %76 = vector.multi_reduction <maximumf>, %75, %cst_25 [1] : vector<16x16xf32> to vector<16xf32>
    %77 = vector.shape_cast %76 : vector<16xf32> to vector<16x1xf32>
    %78 = vector.broadcast %77 : vector<16x1xf32> to vector<16x16xf32>
    %79 = arith.subf %75, %78 : vector<16x16xf32>
    %80 = math.exp %79 : vector<16x16xf32>
    %cst_26 = arith.constant dense<0.000000e+00> : vector<16xf32>
    %81 = vector.multi_reduction <add>, %80, %cst_26 [1] : vector<16x16xf32> to vector<16xf32>
    %82 = vector.shape_cast %81 : vector<16xf32> to vector<16x1xf32>
    %83 = vector.broadcast %82 : vector<16x1xf32> to vector<16x16xf32>
    %84 = arith.divf %80, %83 : vector<16x16xf32>
    %cst_27 = arith.constant dense<0.000000e+00> : vector<16x8xf32>
    %85 = tpu.matmul %84, %70, %cst_27 {dimension_numbers = #tpu.dot_dimension_numbers<[1], [0], [0], [1], [0, 0, 1, 1], [], []>} : vector<16x16xf32>, vector<16x8xf32>, vector<16x8xf32> -> vector<16x8xf32>
    %c0_28 = arith.constant 0 : index
    %c16 = arith.constant 16 : index
    %86 = vector.load %arg8[%c0_28, %c16] : memref<16x32xf32, #tpu.memory_space<vmem>>, vector<16x8xf32>
    tpu.vector_store %arg8[%c0_28, %c16], %85 {strides = array<i32>} : memref<16x32xf32, #tpu.memory_space<vmem>>, vector<16x8xf32>,
    %87 = vector.extract_strided_slice %31 {offsets = [0, 24], sizes = [16, 8], strides = [1, 1]} : vector<16x64xf32> to vector<16x8xf32>
    %88 = vector.extract_strided_slice %31 {offsets = [0, 56], sizes = [16, 8], strides = [1, 1]} : vector<16x64xf32> to vector<16x8xf32>
    %89 = tpu.transpose %87, [1, 0] : vector<16x8xf32> -> vector<8x16xf32>
    %cst_29 = arith.constant dense<0.000000e+00> : vector<16x16xf32>
    %90 = tpu.matmul %87, %89, %cst_29 {dimension_numbers = #tpu.dot_dimension_numbers<[1], [0], [0], [1], [0, 0, 1, 1], [], []>} : vector<16x8xf32>, vector<8x16xf32>, vector<16x16xf32> -> vector<16x16xf32>
    %91 = vector.broadcast %0 : f32 to vector<16x16xf32>
    %92 = arith.mulf %90, %91 : vector<16x16xf32>
    %93 = arith.addf %92, %32 : vector<16x16xf32>
    %cst_30 = arith.constant dense<0xFF800000> : vector<16xf32>
    %94 = vector.multi_reduction <maximumf>, %93, %cst_30 [1] : vector<16x16xf32> to vector<16xf32>
    %95 = vector.shape_cast %94 : vector<16xf32> to vector<16x1xf32>
    %96 = vector.broadcast %95 : vector<16x1xf32> to vector<16x16xf32>
    %97 = arith.subf %93, %96 : vector<16x16xf32>
    %98 = math.exp %97 : vector<16x16xf32>
    %cst_31 = arith.constant dense<0.000000e+00> : vector<16xf32>
    %99 = vector.multi_reduction <add>, %98, %cst_31 [1] : vector<16x16xf32> to vector<16xf32>
    %100 = vector.shape_cast %99 : vector<16xf32> to vector<16x1xf32>
    %101 = vector.broadcast %100 : vector<16x1xf32> to vector<16x16xf32>
    %102 = arith.divf %98, %101 : vector<16x16xf32>
    %cst_32 = arith.constant dense<0.000000e+00> : vector<16x8xf32>
    %103 = tpu.matmul %102, %88, %cst_32 {dimension_numbers = #tpu.dot_dimension_numbers<[1], [0], [0], [1], [0, 0, 1, 1], [], []>} : vector<16x16xf32>, vector<16x8xf32>, vector<16x8xf32> -> vector<16x8xf32>
    %c0_33 = arith.constant 0 : index
    %c24 = arith.constant 24 : index
    %104 = vector.load %arg8[%c0_33, %c24] : memref<16x32xf32, #tpu.memory_space<vmem>>, vector<16x8xf32>
    tpu.vector_store %arg8[%c0_33, %c24], %103 {strides = array<i32>} : memref<16x32xf32, #tpu.memory_space<vmem>>, vector<16x8xf32>,
    %c0_34 = arith.constant 0 : index
    %c0_35 = arith.constant 0 : index
    %105 = vector.load %arg8[%c0_34, %c0_35] : memref<16x32xf32, #tpu.memory_space<vmem>>, vector<16x32xf32>
    %c0_36 = arith.constant 0 : index
    %c0_37 = arith.constant 0 : index
    %106 = vector.load %arg5[%c0_36, %c0_37] : memref<32x128xf32, #tpu.memory_space<vmem>>, vector<32x128xf32>
    %cst_38 = arith.constant dense<0.000000e+00> : vector<16x128xf32>
    %107 = tpu.matmul %105, %106, %cst_38 {dimension_numbers = #tpu.dot_dimension_numbers<[1], [0], [0], [1], [0, 0, 1, 1], [], []>} : vector<16x32xf32>, vector<32x128xf32>, vector<16x128xf32> -> vector<16x128xf32>
    %c0_39 = arith.constant 0 : index
    %c0_40 = arith.constant 0 : index
    %108 = vector.load %arg6[%c0_39, %c0_40] : memref<1x128xf32, #tpu.memory_space<vmem>>, vector<1x128xf32>
    %109 = vector.broadcast %108 : vector<1x128xf32> to vector<16x128xf32>
    %110 = arith.addf %107, %109 : vector<16x128xf32>
    %c0_41 = arith.constant 0 : index
    %c0_42 = arith.constant 0 : index
    %111 = vector.load %arg7[%c0_41, %c0_42] : memref<16x128xf32, #tpu.memory_space<vmem>>, vector<16x128xf32>
    tpu.vector_store %arg7[%c0_41, %c0_42], %110 {strides = array<i32>} : memref<16x128xf32, #tpu.memory_space<vmem>>, vector<16x128xf32>,
    return
  }
  func.func @transform_0(%arg0: i32) -> (i32, i32) {
    %c0_i32 = arith.constant 0 : i32
    %c0_i32_0 = arith.constant 0 : i32
    %c0_i32_1 = arith.constant 0 : i32
    return %c0_i32, %c0_i32_0 : i32, i32
  }
  func.func @transform_1(%arg0: i32) -> (i32, i32) {
    %c0_i32 = arith.constant 0 : i32
    %c0_i32_0 = arith.constant 0 : i32
    %c0_i32_1 = arith.constant 0 : i32
    return %c0_i32, %c0_i32_0 : i32, i32
  }
  func.func @transform_2(%arg0: i32) -> (i32, i32) {
    %c0_i32 = arith.constant 0 : i32
    %c0_i32_0 = arith.constant 0 : i32
    %c0_i32_1 = arith.constant 0 : i32
    return %c0_i32, %c0_i32_0 : i32, i32
  }
  func.func @transform_3(%arg0: i32) -> (i32, i32) {
    %c0_i32 = arith.constant 0 : i32
    %c0_i32_0 = arith.constant 0 : i32
    %c0_i32_1 = arith.constant 0 : i32
    return %c0_i32, %c0_i32_0 : i32, i32
  }
  func.func @transform_4(%arg0: i32) -> (i32, i32) {
    %c0_i32 = arith.constant 0 : i32
    %c0_i32_0 = arith.constant 0 : i32
    %c0_i32_1 = arith.constant 0 : i32
    return %c0_i32, %c0_i32_0 : i32, i32
  }
  func.func @transform_5(%arg0: i32) -> (i32, i32) {
    %c0_i32 = arith.constant 0 : i32
    %c0_i32_0 = arith.constant 0 : i32
    %c0_i32_1 = arith.constant 0 : i32
    return %c0_i32, %c0_i32_0 : i32, i32
  }
  func.func @transform_6(%arg0: i32) -> (i32, i32) {
    %c0_i32 = arith.constant 0 : i32
    %c0_i32_0 = arith.constant 0 : i32
    %c0_i32_1 = arith.constant 0 : i32
    return %c0_i32, %c0_i32_0 : i32, i32
  }
}

</mosaic_0001>

<bundles_post_ra>
// kernel: gpt_forward.1
= control target key start
LH: loop header
LB: loop body
LE: loop exit
PB: predicated region body
PF: predicated region fallthrough
CT: control target
= control target key end

     0   :  { %v1570_v2 = vmov 0   ;;  %s1815_s0 = inlined_call_operand.vmem [shape: s32[16,1], index: 0, kind: input, shape index: {}]   ;;  %s1816_s1 = inlined_call_operand.vmem [shape: f32[16,16], index: 1, kind: input, shape index: {}]   ;;  %s1817_s2 = inlined_call_operand.vmem [shape: f32[128,32], index: 2, kind: input, shape index: {}]   ;;  %s1818_s3 = inlined_call_operand.vmem [shape: f32[32,64], index: 3, kind: input, shape index: {}]   ;;  %s1819_s4 = inlined_call_operand.vmem [shape: f32[32,128], index: 4, kind: input, shape index: {}]   ;;  %s1820_s5 = inlined_call_operand.vmem [shape: f32[1,128], index: 5, kind: input, shape index: {}]   ;;  %s1821_s6 = inlined_call_operand.hbm [shape: f32[16,128], index: 6, kind: output, shape index: {}]  }
   0x1   :  { %v29_v0 = vld [vmem:[%s1815_s0] sm:$0xff]  ;;  %1493 = vset.pattern.permute.xlu0 %v1570_v2  ;;  %v74_v3 = vld [vmem:[%s1817_s2 + $0x8] sm:$0xff]  ;;  %v75_v4 = vld [vmem:[%s1817_s2 + $0x10] sm:$0xff] }
   0x2   :  { %v73_v1 = vld [vmem:[%s1817_s2] sm:$0xff]  ;;  %v76_v5 = vld [vmem:[%s1817_s2 + $0x18] sm:$0xff]  ;;  %32 = vperm.xlu0 %1493, %v29_v0   ;;  %v30_v8 = vld [vmem:[%s1815_s0 + $0x8] sm:$0xff] }
   0x3   :  { %v1391_v6 = vpack.c.bf16 %v74_v3, %v73_v1  ;;  %v1395_v7 = vpack.c.bf16 %v76_v5, %v75_v4  ;;  %v77_v9 = vld [vmem:[%s1817_s2 + $0x20] sm:$0xff]  ;;  %v78_v10 = vld [vmem:[%s1817_s2 + $0x28] sm:$0xff] }
   0x4   :  { %v1399_v11 = vpack.c.bf16 %v78_v10, %v77_v9 }
   0x5   :  { %1392 = vmatprep.subr.bf16.mxu0 %v1391_v6 }
   0x6   :  { %1394 = vmatpush3.bf16.msra.mxu0 %v1391_v6  ;;  %35 = vperm.xlu0 %1493, %v30_v8  }
   0x7   :  { %1396 = vmatprep.subr.bf16.mxu0 %v1395_v7 }
   0x8   :  { %11 = vsyncpa [#allocation4], 0  ;;  %v79_v12 = vld [vmem:[%s1817_s2 + $0x30] sm:$0xff]  ;;  %v80_v13 = vld [vmem:[%s1817_s2 + $0x38] sm:$0xff]  ;;  %v24_v33 = vlaneseq  ;;  %v1571_v42 = vmov 1.0   ;;  %vm168_vm6 = vcmask 261120  }
   0x9   :  { %v164_v14 = vld [vmem:[%s1818_s3] sm:$0xff]  ;;  %v165_v15 = vld [vmem:[%s1818_s3 + $0x8] sm:$0xff]  ;;  %v166_v16 = vld [vmem:[%s1818_s3 + $0x10] sm:$0xff]  ;;  %v1403_v19 = vpack.c.bf16 %v80_v13, %v79_v12  ;;  %vm252_vm7 = vcmask 64512   ;;  %vm338_vm9 = vcmask 130048   ;;  %s1573_s17 = smov 112  }
   0xa   :  { %1398 = vmatpush3.bf16.msra.mxu0 %v1395_v7  ;;  %v1423_v17 = vpack.c.bf16 %v165_v15, %v164_v14  ;;  %v167_v18 = vld [vmem:[%s1818_s3 + $0x18] sm:$0xff]  ;;  %v81_v21 = vld [vmem:[%s1817_s2 + $0x40] sm:$0xff]  ;;  %v82_v22 = vld [vmem:[%s1817_s2 + $0x48] sm:$0xff]  ;;  %v27_v34 = vshrl.u32 %v24_v33, 7  ;;  %v25_v37 = vand.u32 127, %v24_v33  ;;  %s1574_s18 = smov 120  }
   0xb   :  { %1400 = vmatprep.subr.bf16.mxu0 %v1399_v11  ;;  %v1427_v20 = vpack.c.bf16 %v167_v18, %v166_v16  ;;  %v1407_v23 = vpack.c.bf16 %v82_v22, %v81_v21  ;;  %v83_v24 = vld [vmem:[%s1817_s2 + $0x50] sm:$0xff]  ;;  %v84_v25 = vld [vmem:[%s1817_s2 + $0x58] sm:$0xff]  ;;  %v85_v27 = vld [vmem:[%s1817_s2 + $0x60] sm:$0xff]  ;;  %s1575_s19 = smov 80   ;;  %s1576_s20 = smov 88   ;;  %vm654_vm10 = vcmask 130112  }
   0xc   :  { %1424 = vmatprep.subr.bf16.mxu1 %v1423_v17  ;;  %v1411_v26 = vpack.c.bf16 %v84_v25, %v83_v24  ;;  %v86_v28 = vld [vmem:[%s1817_s2 + $0x68] sm:$0xff]  ;;  %v87_v30 = vld [vmem:[%s1817_s2 + $0x70] sm:$0xff]  ;;  %v88_v31 = vld [vmem:[%s1817_s2 + $0x78] sm:$0xff]  ;;  %v43_v35 = vand.u32 7, %v27_v34  ;;  %v28_v36 = vadd.s32 8, %v27_v34  ;;  %s1577_s21 = smov 104  }
   0xd   :  { %1426 = vmatpush3.bf16.msra.mxu1 %v1423_v17  ;;  %v1415_v29 = vpack.c.bf16 %v86_v28, %v85_v27  ;;  %v1419_v32 = vpack.c.bf16 %v88_v31, %v87_v30  ;;  %vm1693_vm8 = vmpackc.low %vm252_vm7, %vm252_vm7  ;;  %v1714_v53 = vld [vmem:[%s1816_s1] sm:$0xff]  ;;  %v1719_v56 = vld [vmem:[%s1816_s1 + $0x8] sm:$0xff]  ;;  %s1572_s1 = smov 96   ;;  %s1578_s22 = smov 8   ;;  %vm861_vm11 = vcmask 195712   ;;  %vm1068_vm12 = vcmask 261312  }
   0xe   :  { %1402 = vmatpush3.bf16.msra.mxu0 %v1399_v11  ;;  %1428 = vmatprep.subr.bf16.mxu1 %v1427_v20  ;;  %v63_v38 = vadd.s32 120, %v43_v35  ;;  %v50_v39 = vand.u32 7, %v28_v36  ;;  %s1579_s23 = smov 72   ;;  %s1580_s24 = smov 16  }
   0xf   :  { %1404 = vmatprep.subr.bf16.mxu0 %v1403_v19  ;;  %s1581_s8 = smov 24   ;;  %s1582_s10 = smov [#allocation3]  }
  0x10   :  { %vm65_vm0 = vcmp.eq.s32.totalorder %v25_v37, %v63_v38  ;;  %v64_v40 = vadd.s32 120, %v50_v39  ;;  %s1172_s11 = sshll.u32 %s1582_s10, 4  ;;  %s1173_s11 = int_to_ptr.vmem [resolvable:$true] %s1172_s11 }
  0x11   :  { %1430 = vmatpush3.bf16.msra.mxu1 %v1427_v20  ;;  %s1546_s12 = scalar_lea.vmem %s1173_s11, 256  ;;  %p1551_p1 = scmp.lt.s32.totalorder %s1173_s11, %s1173_s11 }
  0x12   :  { %1406 = vmatpush3.bf16.msra.mxu0 %v1403_v19  ;;  %vm66_vm3 = vcmp.eq.s32.totalorder %v25_v37, %v64_v40  ;;  %p1547_p0 = scmp.ne.s32.totalorder %s1173_s11, %s1546_s12  ;;  %p1552_p2 = scmp.lt.s32.totalorder %s1546_s12, %s1546_s12 }
  0x13   :  { %1408 = vmatprep.subr.bf16.mxu0 %v1407_v23 }
  0x14   :  { %p1553_p3 = por %p1552_p2, %p1551_p1 }
  0x16   :  { %1410 = vmatpush3.bf16.msra.mxu0 %v1407_v23  ;;  %p1554_p4 = pnand %p1553_p3, %p1547_p0 }
  0x17   :  { %1412 = vmatprep.subr.bf16.mxu0 %v1411_v26 }
  0x1a   :  { %1414 = vmatpush3.bf16.msra.mxu0 %v1411_v26 }
  0x1b   :  { %1416 = vmatprep.subr.bf16.mxu0 %v1415_v29 }
  0x1e   :  { %1418 = vmatpush3.bf16.msra.mxu0 %v1415_v29 }
  0x1f   :  { %1420 = vmatprep.subr.bf16.mxu0 %v1419_v32 }
  0x22   :  { %1422 = vmatpush3.bf16.msra.mxu0 %v1419_v32 }
  0x81   :  { %v33_v41 = vpop.permute.xlu0 %32 }
  0x82   :  { %vm37_vm1 = vcmp.eq.s32.totalorder %v25_v37, %v33_v41 }
  0x83   :  { %vm67_vm2 = vmor %vm37_vm1, %vm65_vm0 }
  0x84   :  { %1310 = vmatprep.mubr.msk.f32.mxu0 %vm67_vm2, %v1571_v42 }
  0x85   :  { %v36_v43 = vpop.permute.xlu0 %35 }
  0x86   :  { %vm38_vm4 = vcmp.eq.s32.totalorder %v25_v37, %v36_v43 }
  0x87   :  { %vm68_vm5 = vmor %vm38_vm4, %vm66_vm3 }
  0x88   :  { %1311 = vmatmul.mubr.msk.f32.vlgmr.msra.gmra.mrb[0].mxu0 %vm68_vm5, %v1571_v42 }
 0x15b   :  { %v1312_v44 = vpop.f32.mrb[0].mxu0 }
 0x15c   :  { %v155_v45 = vpop.f32.mrb[1].mxu0 }
 0x15d   :  { %1321 = vmatprep.mubr.msk.f32.mxu1 %vm168_vm6, %v155_v45 }
 0x15e   :  { %1322 = vmatmul.mubr.msk.f32.vlgmr.msra.gmra.mrb[0].mxu1 %vm168_vm6, %v1312_v44 }
 0x231   :  { %v1687_v46 = vpop.f32.mrb[0].mxu1 }
 0x232   :  { %v1689_v47 = vpop.f32.mrb[1].mxu1 }
 0x233   :  { %1328 = vmatprep.mubr.msk.f32.mxu1 %vm252_vm7, %v1689_v47  ;;  %v1431_v49 = vpack.c.bf16 %v1687_v46, %v1689_v47  ;;  %v1703_v50 = vpack.i.bf16 %v1687_v46, %v1689_v47 }
 0x235   :  { %1433 = vmatprep.subr.msk.bf16.mxu1 %vm1693_vm8, %v1431_v49 }
 0x236   :  { %1436 = vmatpush3.bf16.xpose.msk.msra.mxu1 %vm1693_vm8, %v1431_v49 }
 0x23d   :  { %1329 = vmatmul.mubr.msk.f32.vlgmr.msra.gmra.mrb[2].mxu1 %vm252_vm7, %v1687_v46 }
 0x310   :  { %v1330_v51 = vpop.f32.mrb[2].mxu1 }
 0x311   :  { %v325_v52 = vpop.f32.mrb[3].mxu1  ;;  %v335_v54 = vmul.f32 0.17677669, %v1330_v51 }
 0x312   :  { %v334_v55 = vmul.f32 0.17677669, %v325_v52 }
 0x313   :  { %v337_v59 = vadd.f32 %v335_v54, %v1719_v56 }
 0x314   :  { %v336_v57 = vadd.f32 %v334_v55, %v1714_v53 }
 0x315   :  { %v342_v60 = vsel %vm338_vm9, %v337_v59, -inf }
 0x316   :  { %v339_v58 = vsel %vm338_vm9, %v336_v57, -inf }
 0x317   :  { %340 = vmax.xlane.f32.xlu1 %v339_v58 }
 0x31b   :  { %343 = vmax.xlane.f32.xlu1 %v342_v60 }
 0x3a4   :  { %v341_v61 = vpop.xlane.xlu1 %340 }
 0x3a5   :  { %v345_v62 = vsub.f32 %v336_v57, %v341_v61 }
 0x3a7   :  { %v347_v63 = vmul.f32 1.442695, %v345_v62 }
 0x3a8   :  { %v344_v0 = vpop.xlane.xlu1 %343 }
 0x3a9   :  { %1514 = vpow2.f32 %v347_v63  ;;  %v346_v1 = vsub.f32 %v337_v59, %v344_v0 }
 0x3ab   :  { %v349_v2 = vmul.f32 1.442695, %v346_v1 }
 0x3ad   :  { %1516 = vpow2.f32 %v349_v2 }
 0x3b3   :  { %v1515_v3 = vpop.eup %1514 }
 0x3b4   :  { %v351_v4 = vsel %vm338_vm9, %v1515_v3, 0.0 }
 0x3b5   :  { %352 = vadd.xlane.f32.xlu0 %v351_v4 }
 0x3b7   :  { %v1517_v5 = vpop.eup %1516 }
 0x3b8   :  { %v354_v6 = vsel %vm338_vm9, %v1517_v5, 0.0 }
 0x3b9   :  { %355 = vadd.xlane.f32.xlu1 %v354_v6 }
 0x3ca   :  { %1495 = vrot.lane.b32.xlu1 %v1703_v50, %s1572_s1 }
 0x3cb   :  { %659 = vrot.lane.b32.xlu0 %v1687_v46, %s1573_s17 }
 0x3ce   :  { %450 = vrot.lane.b32.xlu1 %v1689_v47, %s1574_s18 }
 0x3d2   :  { %452 = vrot.lane.b32.xlu1 %v1687_v46, %s1574_s18 }
 0x3d6   :  { %657 = vrot.lane.b32.xlu1 %v1689_v47, %s1573_s17 }
 0x442   :  { %v353_v7 = vpop.xlane.xlu0 %352 }
 0x443   :  { %1518 = vrcp.f32 %v353_v7 }
 0x446   :  { %v356_v8 = vpop.xlane.xlu1 %355  ;;  %v660_v20 = vpop.permute.xlu0 %659 }
 0x447   :  { %1520 = vrcp.f32 %v356_v8 }
 0x44a   :  { %v1496_v9 = vpop.permute.xlu1 %1495 }
 0x44b   :  { %v1498_v10 = vunpack.i.h.bf16 %v1496_v9  ;;  %v1497_v11 = vunpack.i.l.bf16 %v1496_v9 }
 0x44d   :  { %v1519_v12 = vpop.eup %1518  ;;  %v1437_v13 = vpack.c.bf16 %v1498_v10, %v1497_v11 }
 0x44e   :  { %v451_v14 = vpop.permute.xlu1 %450  ;;  %v358_v15 = vmul.f32 %v1519_v12, %v1515_v3 }
 0x44f   :  { %1438 = vmatprep.subr.bf16.mxu1 %v1437_v13 }
 0x450   :  { %1440 = vmatpush3.bf16.msra.mxu1 %v1437_v13  ;;  %1335 = vmatprep.mubr.msk.f32.mxu1 %vm338_vm9, %v358_v15 }
 0x451   :  { %v1521_v16 = vpop.eup %1520 }
 0x452   :  { %v360_v17 = vmul.f32 %v1521_v16, %v1517_v5  ;;  %v453_v18 = vpop.permute.xlu1 %452 }
 0x453   :  { %v1441_v19 = vpack.c.bf16 %v453_v18, %v451_v14 }
 0x454   :  { %1336 = vmatmul.mubr.msk.f32.vlgmr.msra.gmra.mrb[4].mxu1 %vm338_vm9, %v360_v17 }
 0x455   :  { %1443 = vmatprep.subr.msk.bf16.mxu1 %vm1693_vm8, %v1441_v19  ;;  %1342 = vmatprep.mubr.msk.f32.mxu1 %vm252_vm7, %v451_v14 }
 0x456   :  { %v658_v21 = vpop.permute.xlu1 %657 }
 0x457   :  { %v1451_v22 = vpack.c.bf16 %v660_v20, %v658_v21  ;;  %1356 = vmatprep.mubr.msk.f32.mxu0 %vm252_vm7, %v658_v21 }
 0x459   :  { %1446 = vmatpush3.bf16.xpose.msk.msra.mxu1 %vm1693_vm8, %v1441_v19  ;;  %1453 = vmatprep.subr.msk.bf16.mxu0 %vm1693_vm8, %v1451_v22 }
 0x45a   :  { %1456 = vmatpush3.bf16.xpose.msk.msra.mxu0 %vm1693_vm8, %v1451_v22 }
 0x460   :  { %1343 = vmatmul.mubr.msk.f32.vlgmr.msra.gmra.mrb[6].mxu1 %vm252_vm7, %v453_v18 }
 0x461   :  { %1357 = vmatmul.mubr.msk.f32.vlgmr.msra.gmra.mrb[2].mxu0 %vm252_vm7, %v660_v20 }
 0x527   :  { %v1337_v23 = vpop.f32.mrb[4].mxu1 }
 0x528   :  { %449 = vst.msk [vmem:[#allocation2 + $0x8] sm:$0xff] %vm252_vm7, %v1337_v23  ;;  %v439_v24 = vpop.f32.mrb[5].mxu1 }
 0x529   :  { %448 = vst.msk [vmem:[#allocation2] sm:$0xff] %vm252_vm7, %v439_v24 }
 0x533   :  { %v1344_v25 = vpop.f32.mrb[6].mxu1 }
 0x534   :  { %v534_v26 = vmul.f32 0.17677669, %v1344_v25  ;;  %v524_v27 = vpop.f32.mrb[7].mxu1  ;;  %v1358_v28 = vpop.f32.mrb[2].mxu0 }
 0x535   :  { %v533_v29 = vmul.f32 0.17677669, %v524_v27  ;;  %v731_v30 = vpop.f32.mrb[3].mxu0  ;;  %v741_v35 = vmul.f32 0.17677669, %v1358_v28 }
 0x536   :  { %v740_v31 = vmul.f32 0.17677669, %v731_v30  ;;  %v536_v32 = vadd.f32 %v534_v26, %v1719_v56 }
 0x537   :  { %v535_v33 = vadd.f32 %v533_v29, %v1714_v53  ;;  %v743_v39 = vadd.f32 %v741_v35, %v1719_v56 }
 0x538   :  { %v540_v34 = vsel %vm338_vm9, %v536_v32, -inf  ;;  %v742_v37 = vadd.f32 %v740_v31, %v1714_v53 }
 0x539   :  { %541 = vmax.xlane.f32.xlu0 %v540_v34  ;;  %v537_v36 = vsel %vm338_vm9, %v535_v33, -inf  ;;  %v747_v40 = vsel %vm338_vm9, %v743_v39, -inf }
 0x53a   :  { %538 = vmax.xlane.f32.xlu1 %v537_v36  ;;  %v744_v38 = vsel %vm338_vm9, %v742_v37, -inf }
 0x53e   :  { %745 = vmax.xlane.f32.xlu1 %v744_v38 }
 0x542   :  { %748 = vmax.xlane.f32.xlu1 %v747_v40 }
 0x5c6   :  { %v542_v58 = vpop.xlane.xlu0 %541 }
 0x5c7   :  { %v539_v41 = vpop.xlane.xlu1 %538  ;;  %v544_v59 = vsub.f32 %v536_v32, %v542_v58 }
 0x5c8   :  { %v543_v61 = vsub.f32 %v535_v33, %v539_v41 }
 0x5c9   :  { %v547_v60 = vmul.f32 1.442695, %v544_v59 }
 0x5ca   :  { %v545_v62 = vmul.f32 1.442695, %v543_v61 }
 0x5cb   :  { %v746_v42 = vpop.xlane.xlu1 %745 }
 0x5cc   :  { %v750_v43 = vsub.f32 %v742_v37, %v746_v42 }
 0x5ce   :  { %v752_v44 = vmul.f32 1.442695, %v750_v43 }
 0x5cf   :  { %v749_v45 = vpop.xlane.xlu1 %748 }
 0x5d0   :  { %1522 = vpow2.f32 %v752_v44  ;;  %v751_v49 = vsub.f32 %v743_v39, %v749_v45 }
 0x5d2   :  { %v754_v51 = vmul.f32 1.442695, %v751_v49 }
 0x5d4   :  { %1524 = vpow2.f32 %v754_v51 }
 0x5d5   :  { %1526 = vpow2.f32 %v547_v60 }
 0x5d6   :  { %1528 = vpow2.f32 %v545_v62  ;;  %v1073_v62 = vld [vmem:[%s1819_s4] sm:$0xff] }
 0x5da   :  { %v1523_v52 = vpop.eup %1522 }
 0x5db   :  { %v756_v54 = vsel %vm338_vm9, %v1523_v52, 0.0 }
 0x5dc   :  { %757 = vadd.xlane.f32.xlu0 %v756_v54 }
 0x5de   :  { %v1525_v55 = vpop.eup %1524 }
 0x5df   :  { %v759_v57 = vsel %vm338_vm9, %v1525_v55, 0.0  ;;  %v1527_v63 = vpop.eup %1526 }
 0x5e0   :  { %760 = vadd.xlane.f32.xlu1 %v759_v57  ;;  %v552_v0 = vsel %vm338_vm9, %v1527_v63, 0.0  ;;  %v1529_v1 = vpop.eup %1528 }
 0x5e1   :  { %v549_v2 = vsel %vm338_vm9, %v1529_v1, 0.0 }
 0x5f1   :  { %1505 = vrot.lane.b32.xlu1 %v1703_v50, %s1575_s19 }
 0x5f2   :  { %1500 = vrot.lane.b32.xlu0 %v1703_v50, %s1576_s20 }
 0x5f6   :  { %866 = vrot.lane.b32.xlu0 %v1687_v46, %s1577_s21 }
 0x615   :  { %553 = vadd.xlane.f32.xlu1 %v552_v0 }
 0x619   :  { %550 = vadd.xlane.f32.xlu1 %v549_v2  ;;  %v1076_v2 = vld [vmem:[%s1819_s4 + $0x18] sm:$0xff] }
 0x62a   :  { %864 = vrot.lane.b32.xlu1 %v1689_v47, %s1577_s21 }
 0x669   :  { %v758_v3 = vpop.xlane.xlu0 %757 }
 0x66a   :  { %1530 = vrcp.f32 %v758_v3 }
 0x66d   :  { %v1501_v4 = vpop.permute.xlu0 %1500  ;;  %v761_v46 = vpop.xlane.xlu1 %760 }
 0x66e   :  { %v1503_v5 = vunpack.i.h.bf16 %v1501_v4  ;;  %v1502_v6 = vunpack.i.l.bf16 %v1501_v4 }
 0x670   :  { %v1447_v7 = vpack.c.bf16 %v1503_v5, %v1502_v6 }
 0x671   :  { %v1506_v8 = vpop.permute.xlu1 %1505  ;;  %v867_v20 = vpop.permute.xlu0 %866 }
 0x672   :  { %v1508_v9 = vunpack.i.h.bf16 %v1506_v8  ;;  %v1507_v10 = vunpack.i.l.bf16 %v1506_v8  ;;  %1448 = vmatprep.subr.bf16.mxu1 %v1447_v7 }
 0x673   :  { %1450 = vmatpush3.bf16.msra.mxu1 %v1447_v7 }
 0x674   :  { %v1457_v11 = vpack.c.bf16 %v1508_v9, %v1507_v10  ;;  %v1531_v47 = vpop.eup %1530  ;;  %v1213_v9 = vld [vmem:[%s1820_s5] ss:$0 sm:$0xff] }
 0x675   :  { %v763_v21 = vmul.f32 %v1531_v47, %v1523_v52 }
 0x676   :  { %1458 = vmatprep.subr.bf16.mxu1 %v1457_v11 }
 0x6a2   :  { %v554_v12 = vpop.xlane.xlu1 %553 }
 0x6a3   :  { %1532 = vrcp.f32 %v554_v12 }
 0x6a6   :  { %v551_v13 = vpop.xlane.xlu1 %550 }
 0x6a7   :  { %1534 = vrcp.f32 %v551_v13 }
 0x6a8   :  { %1536 = vrcp.f32 %v761_v46 }
 0x6aa   :  { %v865_v16 = vpop.permute.xlu1 %864 }
 0x6ab   :  { %v1461_v22 = vpack.c.bf16 %v867_v20, %v865_v16 }
 0x6ad   :  { %v1533_v14 = vpop.eup %1532 }
 0x6ae   :  { %v558_v18 = vmul.f32 %v1533_v14, %v1527_v63  ;;  %v1074_v63 = vld [vmem:[%s1819_s4 + $0x8] sm:$0xff] }
 0x6af   :  { %v1471_v0 = vpack.c.bf16 %v1074_v63, %v1073_v62 }
 0x6b1   :  { %v1535_v15 = vpop.eup %1534  ;;  %1472 = vmatprep.subr.bf16.mxu0 %v1471_v0 }
 0x6b2   :  { %v556_v17 = vmul.f32 %v1535_v15, %v1529_v1  ;;  %v1537_v19 = vpop.eup %1536  ;;  %v1075_v1 = vld [vmem:[%s1819_s4 + $0x10] sm:$0xff]  ;;  %1474 = vmatpush3.bf16.msra.mxu0 %v1471_v0 }
 0x6b3   :  { %v765_v23 = vmul.f32 %v1537_v19, %v1525_v55  ;;  %v1475_v3 = vpack.c.bf16 %v1076_v2, %v1075_v1 }
 0x6b4   :  { %1349 = vmatprep.mubr.msk.f32.mxu1 %vm338_vm9, %v556_v17 }
 0x6b5   :  { %1350 = vmatmul.mubr.msk.f32.vlgmr.msra.gmra.mrb[8].mxu1 %vm338_vm9, %v558_v18  ;;  %1476 = vmatprep.subr.bf16.mxu0 %v1475_v3 }
 0x6b6   :  { %1460 = vmatpush3.bf16.msra.mxu1 %v1457_v11  ;;  %1363 = vmatprep.mubr.msk.f32.mxu1 %vm338_vm9, %v763_v21 }
 0x6b7   :  { %1463 = vmatprep.subr.msk.bf16.mxu1 %vm1693_vm8, %v1461_v22  ;;  %1478 = vmatpush3.bf16.msra.mxu0 %v1475_v3 }
 0x6b9   :  { %1364 = vmatmul.mubr.msk.f32.vlgmr.msra.gmra.mrb[10].mxu1 %vm338_vm9, %v765_v23 }
 0x6ba   :  { %1370 = vmatprep.mubr.msk.f32.mxu1 %vm252_vm7, %v865_v16 }
 0x6bf   :  { %1466 = vmatpush3.bf16.xpose.msk.msra.mxu1 %vm1693_vm8, %v1461_v22 }
 0x6c6   :  { %1371 = vmatmul.mubr.msk.f32.vlgmr.msra.gmra.mrb[12].mxu1 %vm252_vm7, %v867_v20 }
 0x788   :  { %v1351_v24 = vpop.f32.mrb[8].mxu1 }
 0x789   :  { %v637_v25 = vpop.f32.mrb[9].mxu1 }
 0x78c   :  { %v1365_v26 = vpop.f32.mrb[10].mxu1 }
 0x78d   :  { %v844_v27 = vpop.f32.mrb[11].mxu1 }
 0x799   :  { %v1372_v28 = vpop.f32.mrb[12].mxu1 }
 0x79a   :  { %v948_v29 = vmul.f32 0.17677669, %v1372_v28  ;;  %v938_v30 = vpop.f32.mrb[13].mxu1 }
 0x79b   :  { %v947_v31 = vmul.f32 0.17677669, %v938_v30 }
 0x79c   :  { %v950_v32 = vadd.f32 %v948_v29, %v1719_v56 }
 0x79d   :  { %v949_v33 = vadd.f32 %v947_v31, %v1714_v53 }
 0x79e   :  { %v954_v34 = vsel %vm338_vm9, %v950_v32, -inf }
 0x79f   :  { %955 = vmax.xlane.f32.xlu0 %v954_v34  ;;  %v951_v48 = vsel %vm338_vm9, %v949_v33, -inf }
 0x7a0   :  { %952 = vmax.xlane.f32.xlu1 %v951_v48 }
 0x82c   :  { %v956_v35 = vpop.xlane.xlu0 %955 }
 0x82d   :  { %v958_v36 = vsub.f32 %v950_v32, %v956_v35  ;;  %v953_v37 = vpop.xlane.xlu1 %952 }
 0x82e   :  { %v957_v38 = vsub.f32 %v949_v33, %v953_v37 }
 0x82f   :  { %v961_v39 = vmul.f32 1.442695, %v958_v36 }
 0x830   :  { %v959_v40 = vmul.f32 1.442695, %v957_v38 }
 0x831   :  { %1538 = vpow2.f32 %v961_v39 }
 0x832   :  { %1540 = vpow2.f32 %v959_v40 }
 0x83b   :  { %v1539_v41 = vpop.eup %1538 }
 0x83c   :  { %v1541_v42 = vpop.eup %1540  ;;  %v966_v56 = vsel %vm338_vm9, %v1539_v41, 0.0 }
 0x83d   :  { %967 = vadd.xlane.f32.xlu1 %v966_v56  ;;  %v963_v53 = vsel %vm338_vm9, %v1541_v42, 0.0 }
 0x83e   :  { %964 = vadd.xlane.f32.xlu0 %v963_v53 }
 0x84e   :  { %648 = vrot.lane.b32.xlu1 %v637_v25, %s1578_s22 }
 0x852   :  { %650 = vrot.lane.b32.xlu1 %v1351_v24, %s1578_s22 }
 0x854   :  { %1510 = vrot.lane.b32.xlu0 %v1703_v50, %s1579_s23 }
 0x856   :  { %857 = vrot.lane.b32.xlu1 %v1365_v26, %s1580_s24 }
 0x858   :  { %855 = vrot.lane.b32.xlu0 %v844_v27, %s1580_s24 }
 0x8ca   :  { %v968_v43 = vpop.xlane.xlu1 %967 }
 0x8cb   :  { %1542 = vrcp.f32 %v968_v43  ;;  %v965_v44 = vpop.xlane.xlu0 %964 }
 0x8cc   :  { %1544 = vrcp.f32 %v965_v44 }
 0x8ce   :  { %v649_v45 = vpop.permute.xlu1 %648 }
 0x8cf   :  { %655 = vst.msk [vmem:[#allocation2] sm:$0xff] %vm654_vm10, %v649_v45  ;;  %v1511_v49 = vpop.permute.xlu0 %1510 }
 0x8d0   :  { %v1513_v51 = vunpack.i.h.bf16 %v1511_v49  ;;  %v1512_v52 = vunpack.i.l.bf16 %v1511_v49 }
 0x8d2   :  { %v1467_v54 = vpack.c.bf16 %v1513_v51, %v1512_v52  ;;  %v651_v55 = vpop.permute.xlu1 %650 }
 0x8d3   :  { %656 = vst.msk [vmem:[#allocation2 + $0x8] sm:$0xff] %vm654_vm10, %v651_v55  ;;  %v856_v57 = vpop.permute.xlu0 %855 }
 0x8d4   :  { %862 = vst.msk [vmem:[#allocation2] sm:$0xff] %vm861_vm11, %v856_v57  ;;  %1468 = vmatprep.subr.bf16.mxu1 %v1467_v54 }
 0x8d5   :  { %v1543_v50 = vpop.eup %1542  ;;  %1470 = vmatpush3.bf16.msra.mxu1 %v1467_v54 }
 0x8d6   :  { %v1545_v58 = vpop.eup %1544  ;;  %v858_v59 = vpop.permute.xlu1 %857  ;;  %v972_v61 = vmul.f32 %v1543_v50, %v1539_v41 }
 0x8d7   :  { %863 = vst.msk [vmem:[#allocation2 + $0x8] sm:$0xff] %vm861_vm11, %v858_v59  ;;  %v970_v60 = vmul.f32 %v1545_v58, %v1541_v42 }
 0x8d9   :  { %1377 = vmatprep.mubr.msk.f32.mxu1 %vm338_vm9, %v970_v60 }
 0x8da   :  { %1378 = vmatmul.mubr.msk.f32.vlgmr.msra.gmra.mrb[14].mxu1 %vm338_vm9, %v972_v61 }
 0x9ad   :  { %v1379_v4 = vpop.f32.mrb[14].mxu1 }
 0x9ae   :  { %1064 = vrot.lane.b32.xlu1 %v1379_v4, %s1581_s8  ;;  %v1051_v46 = vpop.f32.mrb[15].mxu1 }
 0x9af   :  { %1062 = vrot.lane.b32.xlu0 %v1051_v46, %s1581_s8 }
 0xa20   :  { %v1065_v5 = vpop.permute.xlu1 %1064 }
 0xa21   :  { %1070 = vst.msk [vmem:[#allocation2 + $0x8] sm:$0xff] %vm1068_vm12, %v1065_v5  ;;  %v1063_v6 = vpop.permute.xlu0 %1062 }
 0xa22   :  { %1069 = vst.msk [vmem:[#allocation2] sm:$0xff] %vm1068_vm12, %v1063_v6 }
 0xa28   :  { %v1072_v8 = vld [vmem:[#allocation2 + $0x8] sm:$0xff] }
 0xa29   :  { %v1071_v7 = vld [vmem:[#allocation2] sm:$0xff] }
 0xa2a   :  { %1388 = vmatprep.mubr.msk.f32.mxu0 %vm168_vm6, %v1071_v7 }
 0xa2b   :  { %1389 = vmatmul.mubr.msk.f32.vlgmr.msra.gmra.mrb[4].mxu0 %vm168_vm6, %v1072_v8 }
 0xafe   :  { %v1390_v10 = vpop.f32.mrb[4].mxu0 }
 0xaff   :  { %v1162_v11 = vadd.f32 %v1390_v10, %v1213_v9  ;;  %v1156_v12 = vpop.f32.mrb[5].mxu0 }
 0xb00   :  { %v1157_v13 = vadd.f32 %v1213_v9, %v1156_v12 }
 0xb01   :  { %1166 = vst [vmem:[#allocation3 + $0x8] sm:$0xff] %v1162_v11 }
 0xb02   :  { %1165 = vst [vmem:[#allocation3] sm:$0xff] %v1157_v13 }
 0xb03   :  { %1557 = shalt.err (!%p1554_p4)
}
 0xb04   :  { %s1558_s5 = scalar_lea.hbm %s1821_s6, 256 }
 0xb05   :  { %p1559_p5 = scmp.ne.s32.totalorder %s1821_s6, %s1558_s5  ;;  %p1562_p6 = scmp.lt.u32.totalorder %s1558_s5, %s1821_s6 }
 0xb07   :  { %p1564_p7 = pnand %p1562_p6, %p1559_p5 }
 0xb09   :  { %1567 = shalt.err (!%p1564_p7)
}
 0xb0a   :  { %s1583_s1 = smov 128  }
 0xb0b   :  { %1178 = dma.vmem_to_hbm [thread:$0]  %s1173_s11, 256, %s1821_s6, [#allocation4], %s1583_s1, %s1583_s1, %s1578_s22  }
 0xb0c   :  { %1568 = dma.done.wait [#allocation4], 256  }
 0xb0d   :  { %1569 = vsyncadd [#allocation4], 4294967040 }
 0xb0e   :  { %1182 = vsyncpa [#allocation4], 1 }

</bundles_post_ra>
